<compile_context>
chip_gen: v5e
topology: v5e:2x2
jax: 0.10.0
libtpu: 0.0.40
codegen_flags: <defaults>
</compile_context>

<pallas_src>
import jax
import jax.numpy as jnp
from jax.experimental import pallas as pl
from jax.experimental.pallas import tpu as pltpu


# ----------------------------------------------------------------------------
# Kernel: one batch tile of  ReLU(x @ w1 + b1) @ W_head + b_head
# ----------------------------------------------------------------------------
def dueling_dqn_kernel(
    x_ref,      # [TM, IN]    (f32 -- cast to bf16 in-kernel)
    w1_ref,     # [IN, HID]   (bf16)
    b1_ref,     # [1, HID]    (f32)
    wh_ref,     # [HID, A]    (bf16, folded w2 @ (dueling-combined head))
    bh_ref,     # [1, A]      (f32, folded bias)
    out_ref,    # [TM, A]
):
    # Cast x on the VPU inside the kernel (hides under the MXU) -> no separate
    # wrapper-side XLA cast pass over x.
    x = x_ref[...].astype(w1_ref.dtype)
    h = jnp.dot(x, w1_ref[...], preferred_element_type=jnp.float32) + b1_ref[...]
    h = jnp.maximum(h, 0.0)                                   # ReLU, f32 VPU
    out = (jnp.dot(h.astype(wh_ref.dtype), wh_ref[...],
                   preferred_element_type=jnp.float32) + bh_ref[...])
    out_ref[...] = out.astype(out_ref.dtype)


# ----------------------------------------------------------------------------
# One-time parameter preparation (call at parameter-update time, NOT per step)
# ----------------------------------------------------------------------------
def prepare_params(params, *, param_dtype=jnp.bfloat16):
    """Fold value head + advantage head + dueling combine + second linear.

    v + a - mean(a) == f @ w_comb + b_comb   (mean is linear, exact in f32)
    f = h @ w2 + b2 (no nonlinearity)  =>  out = h @ (w2@w_comb) + (b2@w_comb + b_comb)

    All folds done in f32; a single bf16 cast at the end.
    """
    w1, b1, w2, b2, wv, bv, wa, ba = [p.astype(jnp.float32) for p in params]
    w_comb = wa + (wv - jnp.mean(wa, axis=1, keepdims=True))   # [FEAT, A]
    b_comb = ba + (bv - jnp.mean(ba, axis=1, keepdims=True))   # [1, A]
    w_head = w2 @ w_comb                                        # [HID, A]
    b_head = b2 @ w_comb + b_comb                                # [1, A]
    return (
        w1.astype(param_dtype),          # MXU input
        b1,                              # f32 epilogue
        w_head.astype(param_dtype),      # MXU input (single bf16 rounding)
        b_head,                          # f32 epilogue
    )


def _pick_tm(batch, tm=None, min_steps=2):
    """Choose the batch tile.

    Mem/overhead-bound -> want big tiles, but keep >= `min_steps` grid steps
    (when B allows) so v7x's two TensorCores both get work and the x/out
    double-buffer overlaps compute. Keep tm sublane-aligned when tm < B.
    """
    if tm is None:
        tm = 2048
    tm = max(1, min(tm, batch))
    if batch > 8 * min_steps:
        tm = min(tm, pl.cdiv(batch, min_steps))
    if tm < batch:
        tm = max(8, (tm // 8) * 8)
        tm = min(tm, batch)
    return tm


# ----------------------------------------------------------------------------
# Forward wrapper: only the pallas_call (weights already folded / cast)
# ----------------------------------------------------------------------------
def dueling_dqn_forward(x, folded_params, *, tm=None, out_dtype=jnp.float32,
                        vmem_limit_bytes=None):
    w1, b1, w_head, b_head = folded_params
    B, IN = x.shape
    HID = w1.shape[1]
    A = w_head.shape[1]

    tm = _pick_tm(B, tm)
    grid_b = pl.cdiv(B, tm)        # ragged last block handled by Pallas masking

    def resident(arr):
        # Constant index map: same block every grid step -> stays in VMEM.
        nd = arr.ndim
        return pl.BlockSpec(arr.shape, lambda i, _nd=nd: (0,) * _nd)

    return pl.pallas_call(
        dueling_dqn_kernel,
        out_shape=jax.ShapeDtypeStruct((B, A), out_dtype),
        grid_spec=pltpu.PrefetchScalarGridSpec(
            num_scalar_prefetch=0,
            grid=(grid_b,),
            in_specs=[
                pl.BlockSpec((tm, IN), lambda i: (i, 0)),
                resident(w1), resident(b1),
                resident(w_head), resident(b_head),
            ],
            out_specs=pl.BlockSpec((tm, A), lambda i: (i, 0)),
        ),
        compiler_params=pltpu.CompilerParams(
            dimension_semantics=("parallel",),   # batch splits across TCs on v7x
            vmem_limit_bytes=vmem_limit_bytes,
        ),
    )(x, w1, b1, w_head, b_head)


# ----------------------------------------------------------------------------
# Helpers for the self-test
# ----------------------------------------------------------------------------
def init_params(key, in_features, hidden, feat, action_space):
    ks = jax.random.split(key, 8)

    def linear(kw, kb, fan_in, fan_out):
        # PyTorch Linear default init: U(-1/sqrt(fan_in), 1/sqrt(fan_in))
        bound = 1.0 / jnp.sqrt(jnp.float32(fan_in))
        w = jax.random.uniform(kw, (fan_in, fan_out), jnp.float32, -bound, bound)
        b = jax.random.uniform(kb, (1, fan_out), jnp.float32, -bound, bound)
        return w, b

    w1, b1 = linear(ks[0], ks[1], in_features, hidden)
    w2, b2 = linear(ks[2], ks[3], hidden, feat)
    wv, bv = linear(ks[4], ks[5], feat, 1)
    wa, ba = linear(ks[6], ks[7], feat, action_space)
    return (w1, b1, w2, b2, wv, bv, wa, ba)


def reference_forward(x, params):
    # Original (un-folded, full f32) semantics: v + a - mean(a).
    w1, b1, w2, b2, wv, bv, wa, ba = params
    h = jnp.maximum(x @ w1 + b1, 0.0)
    f = h @ w2 + b2
    v = f @ wv + bv
    a = f @ wa + ba
    return v + a - a.mean(axis=-1, keepdims=True)


if __name__ == "__main__":
    IN, HID, FEAT, A = 32, 64, 32, 6
    key = jax.random.PRNGKey(0)
    k_x, k_p, k_x2 = jax.random.split(key, 3)
    params = init_params(k_p, IN, HID, FEAT, A)

    # One-time fold/cast (parameter-update time, off the per-call path).
    folded = prepare_params(params)

    # Small-batch check (single block).
    B = 8
    x = jax.random.normal(k_x, (B, IN), jnp.float32)
    out = jax.block_until_ready(dueling_dqn_forward(x, folded))
    ref = reference_forward(x, params)
    assert out.shape == (B, A), out.shape
    # bf16 MXU weights with f32 accumulation -> loosened tolerance vs f32 ref.
    assert jnp.allclose(out, ref, atol=5e-2, rtol=5e-2), (
        float(jnp.max(jnp.abs(out - ref)))
    )

    # Multi-tile check: exercises tm auto-pick, ragged last block (no wrapper
    # pad) and the "parallel" batch axis.
    B2 = 260
    x2 = jax.random.normal(k_x2, (B2, IN), jnp.float32)
    out2 = jax.block_until_ready(dueling_dqn_forward(x2, folded))
    ref2 = reference_forward(x2, params)
    assert out2.shape == (B2, A), out2.shape
    assert jnp.allclose(out2, ref2, atol=5e-2, rtol=5e-2), (
        float(jnp.max(jnp.abs(out2 - ref2)))
    )

    # Explicit-tm check (partial last block with a different tile size).
    out3 = jax.block_until_ready(dueling_dqn_forward(x2, folded, tm=96))
    assert jnp.allclose(out3, ref2, atol=5e-2, rtol=5e-2), (
        float(jnp.max(jnp.abs(out3 - ref2)))
    )

    print("KERNEL_OK")
</pallas_src>

<mosaic_0001>
module attributes {stable_mosaic.version = 11 : i64} {
  func.func @dueling_dqn_kernel(%arg0: i32, %arg1: memref<8x32xf32, #tpu.memory_space<vmem>>, %arg2: memref<32x64xbf16, #tpu.memory_space<vmem>>, %arg3: memref<1x64xf32, #tpu.memory_space<vmem>>, %arg4: memref<64x6xbf16, #tpu.memory_space<vmem>>, %arg5: memref<1x6xf32, #tpu.memory_space<vmem>>, %arg6: memref<8x6xf32, #tpu.memory_space<vmem>>) attributes {dimension_semantics = [#tpu.dimension_semantics<parallel>], iteration_bounds = array<i64: 1>, scalar_prefetch = 0 : i64, scratch_operands = 0 : i64, tpu.core_type = #tpu.core_type<tc>, window_params = [{transform_indices = @transform_0, window_bounds = array<i64: 8, 32>}, {pipeline_mode = #tpu.pipeline_mode<synchronous>, transform_indices = @transform_1, window_bounds = array<i64: 32, 64>}, {pipeline_mode = #tpu.pipeline_mode<synchronous>, transform_indices = @transform_2, window_bounds = array<i64: 1, 64>}, {pipeline_mode = #tpu.pipeline_mode<synchronous>, transform_indices = @transform_3, window_bounds = array<i64: 64, 6>}, {pipeline_mode = #tpu.pipeline_mode<synchronous>, transform_indices = @transform_4, window_bounds = array<i64: 1, 6>}, {transform_indices = @transform_5, window_bounds = array<i64: 8, 6>}]} {
    %c0 = arith.constant 0 : index
    %c0_0 = arith.constant 0 : index
    %0 = vector.load %arg1[%c0, %c0_0] : memref<8x32xf32, #tpu.memory_space<vmem>>, vector<8x32xf32>
    %1 = arith.truncf %0 : vector<8x32xf32> to vector<8x32xbf16>
    %c0_1 = arith.constant 0 : index
    %c0_2 = arith.constant 0 : index
    %2 = vector.load %arg2[%c0_1, %c0_2] : memref<32x64xbf16, #tpu.memory_space<vmem>>, vector<32x64xbf16>
    %cst = arith.constant dense<0.000000e+00> : vector<8x64xf32>
    %3 = tpu.matmul %1, %2, %cst {dimension_numbers = #tpu.dot_dimension_numbers<[1], [0], [0], [1], [0, 0, 1, 1], [], []>} : vector<8x32xbf16>, vector<32x64xbf16>, vector<8x64xf32> -> vector<8x64xf32>
    %c0_3 = arith.constant 0 : index
    %c0_4 = arith.constant 0 : index
    %4 = vector.load %arg3[%c0_3, %c0_4] : memref<1x64xf32, #tpu.memory_space<vmem>>, vector<1x64xf32>
    %5 = vector.broadcast %4 : vector<1x64xf32> to vector<8x64xf32>
    %6 = arith.addf %3, %5 : vector<8x64xf32>
    %cst_5 = arith.constant 0.000000e+00 : f32
    %7 = vector.broadcast %cst_5 : f32 to vector<8x64xf32>
    %8 = arith.maximumf %6, %7 : vector<8x64xf32>
    %9 = arith.truncf %8 : vector<8x64xf32> to vector<8x64xbf16>
    %c0_6 = arith.constant 0 : index
    %c0_7 = arith.constant 0 : index
    %10 = vector.load %arg4[%c0_6, %c0_7] : memref<64x6xbf16, #tpu.memory_space<vmem>>, vector<64x6xbf16>
    %cst_8 = arith.constant dense<0.000000e+00> : vector<8x6xf32>
    %11 = tpu.matmul %9, %10, %cst_8 {dimension_numbers = #tpu.dot_dimension_numbers<[1], [0], [0], [1], [0, 0, 1, 1], [], []>} : vector<8x64xbf16>, vector<64x6xbf16>, vector<8x6xf32> -> vector<8x6xf32>
    %c0_9 = arith.constant 0 : index
    %c0_10 = arith.constant 0 : index
    %12 = vector.load %arg5[%c0_9, %c0_10] : memref<1x6xf32, #tpu.memory_space<vmem>>, vector<1x6xf32>
    %13 = vector.broadcast %12 : vector<1x6xf32> to vector<8x6xf32>
    %14 = arith.addf %11, %13 : vector<8x6xf32>
    %c0_11 = arith.constant 0 : index
    %c0_12 = arith.constant 0 : index
    %15 = vector.load %arg6[%c0_11, %c0_12] : memref<8x6xf32, #tpu.memory_space<vmem>>, vector<8x6xf32>
    tpu.vector_store %arg6[%c0_11, %c0_12], %14 {strides = array<i32>} : memref<8x6xf32, #tpu.memory_space<vmem>>, vector<8x6xf32>,
    return
  }
  func.func @transform_0(%arg0: i32) -> (i32, i32) {
    %c0_i32 = arith.constant 0 : i32
    %c0_i32_0 = arith.constant 0 : i32
    return %arg0, %c0_i32 : i32, i32
  }
  func.func @transform_1(%arg0: i32) -> (i32, i32) {
    %c0_i32 = arith.constant 0 : i32
    %c0_i32_0 = arith.constant 0 : i32
    %c0_i32_1 = arith.constant 0 : i32
    return %c0_i32, %c0_i32_0 : i32, i32
  }
  func.func @transform_2(%arg0: i32) -> (i32, i32) {
    %c0_i32 = arith.constant 0 : i32
    %c0_i32_0 = arith.constant 0 : i32
    %c0_i32_1 = arith.constant 0 : i32
    return %c0_i32, %c0_i32_0 : i32, i32
  }
  func.func @transform_3(%arg0: i32) -> (i32, i32) {
    %c0_i32 = arith.constant 0 : i32
    %c0_i32_0 = arith.constant 0 : i32
    %c0_i32_1 = arith.constant 0 : i32
    return %c0_i32, %c0_i32_0 : i32, i32
  }
  func.func @transform_4(%arg0: i32) -> (i32, i32) {
    %c0_i32 = arith.constant 0 : i32
    %c0_i32_0 = arith.constant 0 : i32
    %c0_i32_1 = arith.constant 0 : i32
    return %c0_i32, %c0_i32_0 : i32, i32
  }
  func.func @transform_5(%arg0: i32) -> (i32, i32) {
    %c0_i32 = arith.constant 0 : i32
    %c0_i32_0 = arith.constant 0 : i32
    return %arg0, %c0_i32 : i32, i32
  }
}

</mosaic_0001>

<bundles_post_ra>
// kernel: tpu_custom_call.1
= control target key start
LH: loop header
LB: loop body
LE: loop exit
PB: predicated region body
PF: predicated region fallthrough
CT: control target
= control target key end

     0   :  { %s256_s0 = inlined_call_operand.vmem [shape: f32[8,32], index: 0, kind: input, shape index: {}]   ;;  %s257_s1 = inlined_call_operand.vmem [shape: bf16[32,64], index: 1, kind: input, shape index: {}]   ;;  %s258_s2 = inlined_call_operand.vmem [shape: f32[1,64], index: 2, kind: input, shape index: {}]   ;;  %s259_s3 = inlined_call_operand.vmem [shape: bf16[64,6], index: 3, kind: input, shape index: {}]   ;;  %s260_s4 = inlined_call_operand.vmem [shape: f32[1,6], index: 4, kind: input, shape index: {}]   ;;  %s261_s5 = inlined_call_operand.hbm [shape: f32[8,6], index: 5, kind: output, shape index: {}]  }
   0x1   :  { %v161_v0 = vld [vmem:[%s257_s1 + $0x8] sm:$0xff]  ;;  %v160_v1 = vld [vmem:[%s257_s1] sm:$0xff]  ;;  %v165_v2 = vld [vmem:[%s259_s3 + $0x18] sm:$0xff] }
   0x2   :  { %54 = vmatpush.bf16.msra.mxu0 %v161_v0  ;;  %v22_v3 = vld [vmem:[%s256_s0] sm:$0xff] }
   0x3   :  { %10 = vsyncpa [#allocation3], 0  ;;  %107 = vmatpush.bf16.msra.mxu1 %v165_v2  ;;  %v164_v4 = vld [vmem:[%s259_s3 + $0x10] sm:$0xff]  ;;  %v23_v5 = vpack.c.bf16 %v22_v3, %v22_v3  ;;  %vm44_vm0 = vcmask 261120   ;;  %v163_v6 = vld [vmem:[%s259_s3 + $0x8] sm:$0xff]  ;;  %vm99_vm1 = vcmask 523264  }
   0x4   :  { %v162_v7 = vld [vmem:[%s259_s3] sm:$0xff]  ;;  %s195_s9 = smov [#allocation2]   ;;  %s125_s12 = sshll.u32 %s261_s5, 4  ;;  %vm116_vm2 = vcmask 48128   ;;  %s126_s12 = int_to_ptr.hbm [resolvable:$true] %s125_s12 }
   0x5   :  { %v167_v8 = vld [vmem:[%s258_s2] ss:$0 sm:$0xff]  ;;  %s123_s10 = sshll.u32 %s195_s9, 4  ;;  %s124_s10 = int_to_ptr.vmem [resolvable:$true] %s123_s10 }
   0x6   :  { %55 = vmatpush.bf16.msra.mxu0 %v160_v1  ;;  %v168_v14 = vld [vmem:[%s260_s4] ss:$0 sm:$0xff] }
   0x7   :  { %108 = vmatpush.bf16.msra.mxu1 %v164_v4 }
   0x9   :  { %142 = vmatmul.msk.bf16.vlgmr.msra.gmra.mxu0 %vm44_vm0, %v23_v5 }
   0xb   :  { %109 = vmatpush.bf16.msra.mxu1 %v163_v6 }
   0xf   :  { %110 = vmatpush.bf16.msra.mxu1 %v162_v7 }
  0x86   :  { %v57_v9 = vpop.f32.mrf.mxu0 }
  0x87   :  { %v58_v10 = vadd.f32 %v167_v8, %v57_v9 }
  0x89   :  { %v61_v11 = vmax.f32 %v58_v10, 0.0 }
  0x8b   :  { %v62_v12 = vpack.c.bf16 %v61_v11, %v61_v11 }
  0x8d   :  { %159 = vmatmul.msk.bf16.vlgmr.msra.gmra.mxu1 %vm99_vm1, %v62_v12 }
  0x8e   :  { %v59_v13 = vpop.f32.mrf.mxu0 }
 0x10a   :  { %v112_v15 = vpop.f32.mrf.mxu1 }
 0x10b   :  { %v113_v16 = vadd.f32 %v168_v14, %v112_v15 }
 0x10d   :  { %117 = vst.msk [vmem:[#allocation2] sm:$0xff] %vm116_vm2, %v113_v16 }
 0x10e   :  { %128 = dma.vmem_to_hbm [thread:$0]  %s124_s10, 128, %s126_s12, [#allocation3]  }
 0x112   :  { %v114_v17 = vpop.f32.mrf.mxu1 }
 0x113   :  { %193 = dma.done.wait [#allocation3], 128  }
 0x114   :  { %194 = vsyncadd [#allocation3], 4294967168 }
 0x115   :  { %133 = vsyncpa [#allocation3], 1 }

</bundles_post_ra>
